<compile_context>
chip_gen: v7x
topology: tpu7x:2x2x1
jax: 0.10.0
libtpu: 0.0.40
codegen_flags: <defaults>
</compile_context>

<pallas_src>
import functools
import math

import jax
import jax.numpy as jnp
from jax.experimental import pallas as pl
from jax.experimental.pallas import tpu as pltpu

N_QUBITS = 7              # 2**7 = 128 basis states -> exactly one lane register
N_LAYERS = 2
DIM = 2 ** N_QUBITS


# ----------------------------------------------------------------------------
# Batch-independent circuit algebra (runs once in the wrapper, plain JAX).
# ----------------------------------------------------------------------------
def _apply_param_layers(st, params, n_qubits, n_layers):
    """Apply the parameterized RX/RY/RZ + CNOT-chain layers to complex
    statevectors `st` of shape (..., 2**n_qubits); basis index on last axis,
    qubit 0 = least-significant bit."""
    dim = 2 ** n_qubits
    idx = jnp.arange(dim)

    def part(a, q):          # amplitude of XOR-partner basis state
        return a[..., idx ^ (1 << q)]

    def bit(q):              # q-th bit of the basis index, bool (dim,)
        return ((idx >> q) & 1) == 1

    for layer in range(n_layers):
        for q in range(n_qubits):
            tx = params[layer, q, 0]
            ty = params[layer, q, 1]
            tz = params[layer, q, 2]
            # RX(tx)
            c, s = jnp.cos(0.5 * tx), jnp.sin(0.5 * tx)
            st = c * st - 1j * s * part(st, q)
            # RY(ty)
            c, s = jnp.cos(0.5 * ty), jnp.sin(0.5 * ty)
            st = c * st + jnp.where(bit(q), s, -s) * part(st, q)
            # RZ(tz)
            c, s = jnp.cos(0.5 * tz), jnp.sin(0.5 * tz)
            st = st * jnp.where(bit(q), c + 1j * s, c - 1j * s)
        for q in range(n_qubits - 1):                       # CNOT(q, q+1)
            st = jnp.where(bit(q), part(st, q + 1), st)
    return st


def _build_layers_matrix(params, n_qubits, n_layers):
    """Total unitary of all parameterized layers, as the matrix M such that
    (row-vector) psi' = psi @ M.  Returned fused as [Re(M) | Im(M)] with shape
    (dim, 2*dim) float32 so the kernel needs only one MXU matmul."""
    dim = 2 ** n_qubits
    eye = jnp.eye(dim, dtype=jnp.complex64)       # rows = basis states
    m = _apply_param_layers(eye, params.astype(jnp.float32), n_qubits, n_layers)
    return jnp.concatenate([jnp.real(m), jnp.imag(m)], axis=1).astype(jnp.float32)


# ----------------------------------------------------------------------------
# Pallas kernel
# ----------------------------------------------------------------------------
def _qnn_kernel(x_ref, m_ref, out_ref, *, n_qubits):
    dim = out_ref.shape[-1]

    # ---- classical encoding angles: 2*pi*(x - min) / (max - min)
    x = x_ref[...].astype(jnp.float32)
    xmin = jnp.min(x, axis=-1, keepdims=True)
    xmax = jnp.max(x, axis=-1, keepdims=True)
    denom = jnp.maximum(xmax - xmin, 1e-12)            # NaN guard: constant rows
    xnorm = (2.0 * math.pi) * (x - xmin) * pl.reciprocal(denom, approx=True)

    # vectorized trig for all encoding angles (2 EUP calls total)
    c_all = jnp.cos(0.5 * xnorm)                       # (blk_b, n_feat)
    s_all = jnp.sin(0.5 * xnorm)

    # ---- encoded state: RY(theta_q) on |0...0> is a real product state.
    # Basis-bit masks are batch independent: (1, dim) iota, broadcast over the
    # sublane (batch) axis; the q=0 select initializes `amp` directly.
    lane = jax.lax.broadcasted_iota(jnp.int32, (1, dim), 1)
    amp = None
    for q in range(n_qubits):
        bit = ((lane >> q) & 1) == 1                                   # (1, dim)
        term = jnp.where(bit, s_all[:, q:q + 1], c_all[:, q:q + 1])    # (blk_b, dim)
        amp = term if amp is None else amp * term

    # ---- all parameterized layers + CNOT ladders as one fused matmul (MXU):
    # RHS is [Re | Im] -> (blk_b, 2*dim); the encoded state is real so this is
    # the full complex product. Slices below are static and 128-aligned.
    out2 = jnp.dot(amp, m_ref[...], preferred_element_type=jnp.float32)
    re = out2[:, :dim]
    im = out2[:, dim:]

    # ---- measurement probabilities |amp|^2
    # TODO(synk): reference `_execute_circuit` is an explicit placeholder that
    # returns fixed counts {'0'*n_qubits: 1000} (a constant one-hot row); we
    # return the exact statevector measurement distribution of the built
    # circuit instead of faking the placeholder.
    out_ref[...] = re * re + im * im


def quantum_nn_forward(x, params, *, n_qubits=N_QUBITS, n_layers=N_LAYERS,
                       max_block_rows=1024):
    batch, n_feat = x.shape
    dim = 2 ** n_qubits

    def round_up(n, m):
        return ((n + m - 1) // m) * m

    # Batch tiling: cdiv-based grid, blk_b a multiple of 8 (sublane quantum),
    # >= 2 grid steps once batch >= 16 (pipelining + v7x megacore), capped so
    # very large batches still pipeline and VMEM stays tiny.
    if batch <= 8:
        blk_b = batch                      # block == full array dim is legal
    else:
        blk_b = min(max_block_rows, round_up((batch + 1) // 2, 8))
    grid = (pl.cdiv(batch, blk_b),)

    m_fused = _build_layers_matrix(params, n_qubits, n_layers)   # (dim, 2*dim)

    kernel = functools.partial(_qnn_kernel, n_qubits=n_qubits)
    return pl.pallas_call(
        kernel,
        out_shape=jax.ShapeDtypeStruct((batch, dim), jnp.float32),
        grid=grid,
        in_specs=[
            pl.BlockSpec((blk_b, n_feat), lambda i: (i, 0)),
            # fused [Re | Im] layer unitary, constant across the grid
            pl.BlockSpec((dim, 2 * dim), lambda i: (0, 0)),
        ],
        out_specs=pl.BlockSpec((blk_b, dim), lambda i: (i, 0)),
        compiler_params=pltpu.CompilerParams(
            dimension_semantics=("parallel",)),
    )(x.astype(jnp.float32), m_fused)


# ----------------------------------------------------------------------------
# Pure-JAX reference (full gate-by-gate statevector simulation)
# ----------------------------------------------------------------------------
def _reference_probs(x, params, n_qubits, n_layers):
    batch, _ = x.shape
    dim = 2 ** n_qubits
    idx = jnp.arange(dim)

    xmin = x.min(axis=-1, keepdims=True)
    xmax = x.max(axis=-1, keepdims=True)
    xn = 2.0 * math.pi * (x - xmin) / (xmax - xmin)

    st = jnp.zeros((batch, dim), jnp.complex64).at[:, 0].set(1.0)
    for q in range(n_qubits):                                  # encoding RY
        t = xn[:, q:q + 1]
        c, s = jnp.cos(0.5 * t), jnp.sin(0.5 * t)
        sgn = jnp.where(((idx >> q) & 1) == 1, 1.0, -1.0)
        st = c * st + sgn * s * st[:, idx ^ (1 << q)]
    st = _apply_param_layers(st, params.astype(jnp.float32), n_qubits, n_layers)
    return (jnp.abs(st) ** 2).astype(jnp.float32)


if __name__ == "__main__":
    key = jax.random.PRNGKey(0)
    k_x, k_p, k_x2 = jax.random.split(key, 3)

    batch, n_feat = 8, 16
    x = jax.random.normal(k_x, (batch, n_feat), dtype=jnp.float32)
    # nn.Parameter(torch.randn(n_layers, n_qubits, 3)) -> deterministic normal init
    params = jax.random.normal(k_p, (N_LAYERS, N_QUBITS, 3), dtype=jnp.float32)

    probs = quantum_nn_forward(x, params)
    probs = jax.block_until_ready(probs)

    assert probs.shape == (batch, DIM), probs.shape
    # unitary evolution sanity check: each probability row sums to 1
    assert bool(jnp.all(jnp.abs(probs.sum(axis=-1) - 1.0) < 1e-3))
    # end-to-end correctness vs. gate-by-gate statevector reference
    ref = _reference_probs(x, params, N_QUBITS, N_LAYERS)
    assert bool(jnp.max(jnp.abs(probs - ref)) < 1e-2)

    # exercise the cdiv tiling path (batch not a multiple of the block, >=2
    # grid steps, padded/masked tail block) at a still-small shape
    batch2 = 24
    x2 = jax.random.normal(k_x2, (batch2, n_feat), dtype=jnp.float32)
    probs2 = jax.block_until_ready(quantum_nn_forward(x2, params))
    assert probs2.shape == (batch2, DIM), probs2.shape
    assert bool(jnp.all(jnp.abs(probs2.sum(axis=-1) - 1.0) < 1e-3))
    ref2 = _reference_probs(x2, params, N_QUBITS, N_LAYERS)
    assert bool(jnp.max(jnp.abs(probs2 - ref2)) < 1e-2)

    print("KERNEL_OK")
</pallas_src>

<mosaic_0001>
module attributes {stable_mosaic.version = 11 : i64} {
  func.func @_qnn_kernel(%arg0: i32, %arg1: memref<8x16xf32, #tpu.memory_space<vmem>>, %arg2: memref<128x256xf32, #tpu.memory_space<vmem>>, %arg3: memref<8x128xf32, #tpu.memory_space<vmem>>) attributes {dimension_semantics = [#tpu.dimension_semantics<parallel>], iteration_bounds = array<i64: 1>, scalar_prefetch = 0 : i64, scratch_operands = 0 : i64, tpu.core_type = #tpu.core_type<tc>, window_params = [{transform_indices = @transform_0, window_bounds = array<i64: 8, 16>}, {pipeline_mode = #tpu.pipeline_mode<synchronous>, transform_indices = @transform_1, window_bounds = array<i64: 128, 256>}, {transform_indices = @transform_2, window_bounds = array<i64: 8, 128>}]} {
    %c0 = arith.constant 0 : index
    %c0_0 = arith.constant 0 : index
    %0 = vector.load %arg1[%c0, %c0_0] : memref<8x16xf32, #tpu.memory_space<vmem>>, vector<8x16xf32>
    %cst = arith.constant dense<0x7F800000> : vector<8xf32>
    %1 = vector.multi_reduction <minimumf>, %0, %cst [1] : vector<8x16xf32> to vector<8xf32>
    %2 = vector.shape_cast %1 : vector<8xf32> to vector<8x1xf32>
    %cst_1 = arith.constant dense<0xFF800000> : vector<8xf32>
    %3 = vector.multi_reduction <maximumf>, %0, %cst_1 [1] : vector<8x16xf32> to vector<8xf32>
    %4 = vector.shape_cast %3 : vector<8xf32> to vector<8x1xf32>
    %5 = arith.subf %4, %2 : vector<8x1xf32>
    %cst_2 = arith.constant 9.99999996E-13 : f32
    %6 = vector.broadcast %cst_2 : f32 to vector<8x1xf32>
    %7 = arith.maximumf %5, %6 : vector<8x1xf32>
    %8 = vector.broadcast %2 : vector<8x1xf32> to vector<8x16xf32>
    %9 = arith.subf %0, %8 : vector<8x16xf32>
    %cst_3 = arith.constant 6.28318548 : f32
    %10 = vector.broadcast %cst_3 : f32 to vector<8x16xf32>
    %11 = arith.mulf %10, %9 : vector<8x16xf32>
    %12 = tpu.reciprocal %7 {approx = true} : vector<8x1xf32> -> vector<8x1xf32>
    %13 = vector.broadcast %12 : vector<8x1xf32> to vector<8x16xf32>
    %14 = arith.mulf %11, %13 : vector<8x16xf32>
    %cst_4 = arith.constant 5.000000e-01 : f32
    %15 = vector.broadcast %cst_4 : f32 to vector<8x16xf32>
    %16 = arith.mulf %15, %14 : vector<8x16xf32>
    %17 = math.cos %16 : vector<8x16xf32>
    %cst_5 = arith.constant 5.000000e-01 : f32
    %18 = vector.broadcast %cst_5 : f32 to vector<8x16xf32>
    %19 = arith.mulf %18, %14 : vector<8x16xf32>
    %20 = math.sin %19 : vector<8x16xf32>
    %21 = tpu.iota {dimensions = array<i32: 1>} : vector<1x128xi32>
    %c0_i32 = arith.constant 0 : i32
    %22 = vector.broadcast %c0_i32 : i32 to vector<1x128xi32>
    %23 = arith.shrsi %21, %22 : vector<1x128xi32>
    %c1_i32 = arith.constant 1 : i32
    %24 = vector.broadcast %c1_i32 : i32 to vector<1x128xi32>
    %25 = arith.andi %23, %24 : vector<1x128xi32>
    %c1_i32_6 = arith.constant 1 : i32
    %26 = vector.broadcast %c1_i32_6 : i32 to vector<1x128xi32>
    %27 = arith.cmpi eq, %25, %26 : vector<1x128xi32>
    %28 = vector.extract_strided_slice %20 {offsets = [0, 0], sizes = [8, 1], strides = [1, 1]} : vector<8x16xf32> to vector<8x1xf32>
    %29 = vector.extract_strided_slice %17 {offsets = [0, 0], sizes = [8, 1], strides = [1, 1]} : vector<8x16xf32> to vector<8x1xf32>
    %30 = vector.shape_cast %27 : vector<1x128xi1> to vector<1x128xi1>
    %31 = vector.broadcast %30 : vector<1x128xi1> to vector<8x128xi1>
    %32 = vector.shape_cast %28 : vector<8x1xf32> to vector<8x1xf32>
    %33 = vector.broadcast %32 : vector<8x1xf32> to vector<8x128xf32>
    %34 = vector.shape_cast %29 : vector<8x1xf32> to vector<8x1xf32>
    %35 = vector.broadcast %34 : vector<8x1xf32> to vector<8x128xf32>
    %36 = arith.select %31, %33, %35 : vector<8x128xi1>, vector<8x128xf32>
    %c1_i32_7 = arith.constant 1 : i32
    %37 = vector.broadcast %c1_i32_7 : i32 to vector<1x128xi32>
    %38 = arith.shrsi %21, %37 : vector<1x128xi32>
    %c1_i32_8 = arith.constant 1 : i32
    %39 = vector.broadcast %c1_i32_8 : i32 to vector<1x128xi32>
    %40 = arith.andi %38, %39 : vector<1x128xi32>
    %c1_i32_9 = arith.constant 1 : i32
    %41 = vector.broadcast %c1_i32_9 : i32 to vector<1x128xi32>
    %42 = arith.cmpi eq, %40, %41 : vector<1x128xi32>
    %43 = vector.extract_strided_slice %20 {offsets = [0, 1], sizes = [8, 1], strides = [1, 1]} : vector<8x16xf32> to vector<8x1xf32>
    %44 = vector.extract_strided_slice %17 {offsets = [0, 1], sizes = [8, 1], strides = [1, 1]} : vector<8x16xf32> to vector<8x1xf32>
    %45 = vector.shape_cast %42 : vector<1x128xi1> to vector<1x128xi1>
    %46 = vector.broadcast %45 : vector<1x128xi1> to vector<8x128xi1>
    %47 = vector.shape_cast %43 : vector<8x1xf32> to vector<8x1xf32>
    %48 = vector.broadcast %47 : vector<8x1xf32> to vector<8x128xf32>
    %49 = vector.shape_cast %44 : vector<8x1xf32> to vector<8x1xf32>
    %50 = vector.broadcast %49 : vector<8x1xf32> to vector<8x128xf32>
    %51 = arith.select %46, %48, %50 : vector<8x128xi1>, vector<8x128xf32>
    %52 = arith.mulf %36, %51 : vector<8x128xf32>
    %c2_i32 = arith.constant 2 : i32
    %53 = vector.broadcast %c2_i32 : i32 to vector<1x128xi32>
    %54 = arith.shrsi %21, %53 : vector<1x128xi32>
    %c1_i32_10 = arith.constant 1 : i32
    %55 = vector.broadcast %c1_i32_10 : i32 to vector<1x128xi32>
    %56 = arith.andi %54, %55 : vector<1x128xi32>
    %c1_i32_11 = arith.constant 1 : i32
    %57 = vector.broadcast %c1_i32_11 : i32 to vector<1x128xi32>
    %58 = arith.cmpi eq, %56, %57 : vector<1x128xi32>
    %59 = vector.extract_strided_slice %20 {offsets = [0, 2], sizes = [8, 1], strides = [1, 1]} : vector<8x16xf32> to vector<8x1xf32>
    %60 = vector.extract_strided_slice %17 {offsets = [0, 2], sizes = [8, 1], strides = [1, 1]} : vector<8x16xf32> to vector<8x1xf32>
    %61 = vector.shape_cast %58 : vector<1x128xi1> to vector<1x128xi1>
    %62 = vector.broadcast %61 : vector<1x128xi1> to vector<8x128xi1>
    %63 = vector.shape_cast %59 : vector<8x1xf32> to vector<8x1xf32>
    %64 = vector.broadcast %63 : vector<8x1xf32> to vector<8x128xf32>
    %65 = vector.shape_cast %60 : vector<8x1xf32> to vector<8x1xf32>
    %66 = vector.broadcast %65 : vector<8x1xf32> to vector<8x128xf32>
    %67 = arith.select %62, %64, %66 : vector<8x128xi1>, vector<8x128xf32>
    %68 = arith.mulf %52, %67 : vector<8x128xf32>
    %c3_i32 = arith.constant 3 : i32
    %69 = vector.broadcast %c3_i32 : i32 to vector<1x128xi32>
    %70 = arith.shrsi %21, %69 : vector<1x128xi32>
    %c1_i32_12 = arith.constant 1 : i32
    %71 = vector.broadcast %c1_i32_12 : i32 to vector<1x128xi32>
    %72 = arith.andi %70, %71 : vector<1x128xi32>
    %c1_i32_13 = arith.constant 1 : i32
    %73 = vector.broadcast %c1_i32_13 : i32 to vector<1x128xi32>
    %74 = arith.cmpi eq, %72, %73 : vector<1x128xi32>
    %75 = vector.extract_strided_slice %20 {offsets = [0, 3], sizes = [8, 1], strides = [1, 1]} : vector<8x16xf32> to vector<8x1xf32>
    %76 = vector.extract_strided_slice %17 {offsets = [0, 3], sizes = [8, 1], strides = [1, 1]} : vector<8x16xf32> to vector<8x1xf32>
    %77 = vector.shape_cast %74 : vector<1x128xi1> to vector<1x128xi1>
    %78 = vector.broadcast %77 : vector<1x128xi1> to vector<8x128xi1>
    %79 = vector.shape_cast %75 : vector<8x1xf32> to vector<8x1xf32>
    %80 = vector.broadcast %79 : vector<8x1xf32> to vector<8x128xf32>
    %81 = vector.shape_cast %76 : vector<8x1xf32> to vector<8x1xf32>
    %82 = vector.broadcast %81 : vector<8x1xf32> to vector<8x128xf32>
    %83 = arith.select %78, %80, %82 : vector<8x128xi1>, vector<8x128xf32>
    %84 = arith.mulf %68, %83 : vector<8x128xf32>
    %c4_i32 = arith.constant 4 : i32
    %85 = vector.broadcast %c4_i32 : i32 to vector<1x128xi32>
    %86 = arith.shrsi %21, %85 : vector<1x128xi32>
    %c1_i32_14 = arith.constant 1 : i32
    %87 = vector.broadcast %c1_i32_14 : i32 to vector<1x128xi32>
    %88 = arith.andi %86, %87 : vector<1x128xi32>
    %c1_i32_15 = arith.constant 1 : i32
    %89 = vector.broadcast %c1_i32_15 : i32 to vector<1x128xi32>
    %90 = arith.cmpi eq, %88, %89 : vector<1x128xi32>
    %91 = vector.extract_strided_slice %20 {offsets = [0, 4], sizes = [8, 1], strides = [1, 1]} : vector<8x16xf32> to vector<8x1xf32>
    %92 = vector.extract_strided_slice %17 {offsets = [0, 4], sizes = [8, 1], strides = [1, 1]} : vector<8x16xf32> to vector<8x1xf32>
    %93 = vector.shape_cast %90 : vector<1x128xi1> to vector<1x128xi1>
    %94 = vector.broadcast %93 : vector<1x128xi1> to vector<8x128xi1>
    %95 = vector.shape_cast %91 : vector<8x1xf32> to vector<8x1xf32>
    %96 = vector.broadcast %95 : vector<8x1xf32> to vector<8x128xf32>
    %97 = vector.shape_cast %92 : vector<8x1xf32> to vector<8x1xf32>
    %98 = vector.broadcast %97 : vector<8x1xf32> to vector<8x128xf32>
    %99 = arith.select %94, %96, %98 : vector<8x128xi1>, vector<8x128xf32>
    %100 = arith.mulf %84, %99 : vector<8x128xf32>
    %c5_i32 = arith.constant 5 : i32
    %101 = vector.broadcast %c5_i32 : i32 to vector<1x128xi32>
    %102 = arith.shrsi %21, %101 : vector<1x128xi32>
    %c1_i32_16 = arith.constant 1 : i32
    %103 = vector.broadcast %c1_i32_16 : i32 to vector<1x128xi32>
    %104 = arith.andi %102, %103 : vector<1x128xi32>
    %c1_i32_17 = arith.constant 1 : i32
    %105 = vector.broadcast %c1_i32_17 : i32 to vector<1x128xi32>
    %106 = arith.cmpi eq, %104, %105 : vector<1x128xi32>
    %107 = vector.extract_strided_slice %20 {offsets = [0, 5], sizes = [8, 1], strides = [1, 1]} : vector<8x16xf32> to vector<8x1xf32>
    %108 = vector.extract_strided_slice %17 {offsets = [0, 5], sizes = [8, 1], strides = [1, 1]} : vector<8x16xf32> to vector<8x1xf32>
    %109 = vector.shape_cast %106 : vector<1x128xi1> to vector<1x128xi1>
    %110 = vector.broadcast %109 : vector<1x128xi1> to vector<8x128xi1>
    %111 = vector.shape_cast %107 : vector<8x1xf32> to vector<8x1xf32>
    %112 = vector.broadcast %111 : vector<8x1xf32> to vector<8x128xf32>
    %113 = vector.shape_cast %108 : vector<8x1xf32> to vector<8x1xf32>
    %114 = vector.broadcast %113 : vector<8x1xf32> to vector<8x128xf32>
    %115 = arith.select %110, %112, %114 : vector<8x128xi1>, vector<8x128xf32>
    %116 = arith.mulf %100, %115 : vector<8x128xf32>
    %c6_i32 = arith.constant 6 : i32
    %117 = vector.broadcast %c6_i32 : i32 to vector<1x128xi32>
    %118 = arith.shrsi %21, %117 : vector<1x128xi32>
    %c1_i32_18 = arith.constant 1 : i32
    %119 = vector.broadcast %c1_i32_18 : i32 to vector<1x128xi32>
    %120 = arith.andi %118, %119 : vector<1x128xi32>
    %c1_i32_19 = arith.constant 1 : i32
    %121 = vector.broadcast %c1_i32_19 : i32 to vector<1x128xi32>
    %122 = arith.cmpi eq, %120, %121 : vector<1x128xi32>
    %123 = vector.extract_strided_slice %20 {offsets = [0, 6], sizes = [8, 1], strides = [1, 1]} : vector<8x16xf32> to vector<8x1xf32>
    %124 = vector.extract_strided_slice %17 {offsets = [0, 6], sizes = [8, 1], strides = [1, 1]} : vector<8x16xf32> to vector<8x1xf32>
    %125 = vector.shape_cast %122 : vector<1x128xi1> to vector<1x128xi1>
    %126 = vector.broadcast %125 : vector<1x128xi1> to vector<8x128xi1>
    %127 = vector.shape_cast %123 : vector<8x1xf32> to vector<8x1xf32>
    %128 = vector.broadcast %127 : vector<8x1xf32> to vector<8x128xf32>
    %129 = vector.shape_cast %124 : vector<8x1xf32> to vector<8x1xf32>
    %130 = vector.broadcast %129 : vector<8x1xf32> to vector<8x128xf32>
    %131 = arith.select %126, %128, %130 : vector<8x128xi1>, vector<8x128xf32>
    %132 = arith.mulf %116, %131 : vector<8x128xf32>
    %c0_20 = arith.constant 0 : index
    %c0_21 = arith.constant 0 : index
    %133 = vector.load %arg2[%c0_20, %c0_21] : memref<128x256xf32, #tpu.memory_space<vmem>>, vector<128x256xf32>
    %cst_22 = arith.constant dense<0.000000e+00> : vector<8x256xf32>
    %134 = tpu.matmul %132, %133, %cst_22 {dimension_numbers = #tpu.dot_dimension_numbers<[1], [0], [0], [1], [0, 0, 1, 1], [], []>} : vector<8x128xf32>, vector<128x256xf32>, vector<8x256xf32> -> vector<8x256xf32>
    %135 = vector.extract_strided_slice %134 {offsets = [0, 0], sizes = [8, 128], strides = [1, 1]} : vector<8x256xf32> to vector<8x128xf32>
    %136 = vector.extract_strided_slice %134 {offsets = [0, 128], sizes = [8, 128], strides = [1, 1]} : vector<8x256xf32> to vector<8x128xf32>
    %137 = arith.mulf %135, %135 : vector<8x128xf32>
    %138 = arith.mulf %136, %136 : vector<8x128xf32>
    %139 = arith.addf %137, %138 : vector<8x128xf32>
    %c0_23 = arith.constant 0 : index
    %c0_24 = arith.constant 0 : index
    %140 = vector.load %arg3[%c0_23, %c0_24] : memref<8x128xf32, #tpu.memory_space<vmem>>, vector<8x128xf32>
    tpu.vector_store %arg3[%c0_23, %c0_24], %139 {strides = array<i32>} : memref<8x128xf32, #tpu.memory_space<vmem>>, vector<8x128xf32>,
    return
  }
  func.func @transform_0(%arg0: i32) -> (i32, i32) {
    %c0_i32 = arith.constant 0 : i32
    %c0_i32_0 = arith.constant 0 : i32
    return %arg0, %c0_i32 : i32, i32
  }
  func.func @transform_1(%arg0: i32) -> (i32, i32) {
    %c0_i32 = arith.constant 0 : i32
    %c0_i32_0 = arith.constant 0 : i32
    %c0_i32_1 = arith.constant 0 : i32
    return %c0_i32, %c0_i32_0 : i32, i32
  }
  func.func @transform_2(%arg0: i32) -> (i32, i32) {
    %c0_i32 = arith.constant 0 : i32
    %c0_i32_0 = arith.constant 0 : i32
    return %arg0, %c0_i32 : i32, i32
  }
}

</mosaic_0001>

<bundles_post_ra>
// kernel: tpu_custom_call.1
= control target key start
LH: loop header
LB: loop body
LE: loop exit
PB: predicated region body
PF: predicated region fallthrough
CT: control target
= control target key end

     0   :  { %7 = vsyncpa [#allocation3], 0  ;;  %s760_s0 = inlined_call_operand.hbm [shape: f32[8,16], index: 0, kind: input, shape index: {}]   ;;  %s761_s1 = inlined_call_operand.hbm [shape: f32[128,256], index: 1, kind: input, shape index: {}]   ;;  %s762_s2 = inlined_call_operand.hbm [shape: f32[8,128], index: 2, kind: output, shape index: {}]  }
   0x1   :  { %8 = vsyncpa [#allocation6], 0 }
   0x2   :  { %9 = vsyncpa [#allocation4], 0  ;;  %s640_s9 = smov [#allocation2]   ;;  %s641_s11 = smov [#allocation5]  }
   0x3   :  { %s16_s10 = sshll.u32 %s640_s9, 4  ;;  %s25_s12 = sshll.u32 %s641_s11, 4  ;;  %s17_s10 = int_to_ptr.vmem [resolvable:$true] %s16_s10  ;;  %s674_s12 = int_to_ptr.vmem [resolvable:$true] %s25_s12 }
   0x4   :  { %s568_s15 = scalar_lea.hbm %s760_s0, 128 }
   0x5   :  { %p569_p0 = scmp.ne.s32.totalorder %s760_s0, %s568_s15  ;;  %p572_p1 = scmp.lt.u32.totalorder %s568_s15, %s760_s0 }
   0x7   :  { %p574_p2 = pnand %p572_p1, %p569_p0 }
   0x9   :  { %577 = shalt.err (!%p574_p2)
}
   0xa   :  { %s578_s20 = scalar_lea.vmem %s17_s10, 128  ;;  %p583_p4 = scmp.lt.s32.totalorder %s17_s10, %s17_s10 }
   0xb   :  { %p579_p3 = scmp.ne.s32.totalorder %s17_s10, %s578_s20  ;;  %p584_p5 = scmp.lt.s32.totalorder %s578_s20, %s578_s20 }
   0xd   :  { %p585_p6 = por %p584_p5, %p583_p4 }
   0xf   :  { %p586_p7 = pnand %p585_p6, %p579_p3 }
  0x11   :  { %589 = shalt.err (!%p586_p7)
}
  0x12   :  { %19 = dma.hbm_to_vmem [thread:$0]  %s760_s0, 128, %s17_s10, [#allocation3]  }
  0x13   :  { %s590_s25 = scalar_lea.hbm %s761_s1, 4096 }
  0x14   :  { %p591_p8 = scmp.ne.s32.totalorder %s761_s1, %s590_s25  ;;  %p594_p9 = scmp.lt.u32.totalorder %s590_s25, %s761_s1 }
  0x16   :  { %p596_p10 = pnand %p594_p9, %p591_p8 }
  0x18   :  { %599 = shalt.err (!%p596_p10)
}
  0x19   :  { %s600_s30 = scalar_lea.vmem %s674_s12, 4096  ;;  %p605_p12 = scmp.lt.s32.totalorder %s674_s12, %s674_s12 }
  0x1a   :  { %p601_p11 = scmp.ne.s32.totalorder %s674_s12, %s600_s30  ;;  %p606_p13 = scmp.lt.s32.totalorder %s600_s30, %s600_s30 }
  0x1c   :  { %p607_p0 = por %p606_p13, %p605_p12 }
  0x1e   :  { %p608_p1 = pnand %p607_p0, %p601_p11 }
  0x20   :  { %611 = shalt.err (!%p608_p1)
}
  0x21   :  { %s642_s0 = smov 256   ;;  %s643_s3 = smov 16  }
  0x22   :  { %31 = dma.hbm_to_vmem [thread:$0]  %s761_s1, 4096, %s674_s12, [#allocation6], %s642_s0, %s642_s0, %s643_s3  }
  0x23   :  { %634 = dma.done.wait [#allocation3], 128  }
  0x24   :  { %635 = vsyncadd [#allocation3], 4294967168 }
  0x25   :  { %636 = dma.done.wait [#allocation6], 4096  }
  0x26   :  { %637 = vsyncadd [#allocation6], 4294963200  ;;  %vm39_vm0 = vcmask 130048   ;;  %v38_v0 = vld [vmem:[#allocation2] sm:$0xff]  ;;  %v644_v3 = vmov 1   ;;  %v645_v4 = vmov 0  }
  0x27   :  { %v40_v1 = vsel %vm39_vm0, %v38_v0, inf  ;;  %v43_v2 = vsel %vm39_vm0, %v38_v0, -inf  ;;  %554 = vset.pattern.permute.xlu0 %v644_v3  ;;  %553 = vset.pattern.permute.xlu1 %v645_v4  ;;  %v646_v25 = vmov 2102212464   ;;  %v647_v27 = vmov 920167782  }
  0x28   :  { %41 = vmin.xlane.f32.xlu0 %v40_v1  ;;  %v648_v31 = vmov 1326507024   ;;  %v649_v33 = vmov 683565275   ;;  %v650_v35 = vmov 2475754826  }
  0x29   :  { %v651_v38 = vmov 2131351028   ;;  %s658_s1 = smov [#allocation7]  }
  0x2a   :  { %s480_s6 = sshll.u32 %s658_s1, 4  ;;  %s481_s6 = int_to_ptr.vmem [resolvable:$true] %s480_s6 }
  0x2b   :  { %s612_s7 = scalar_lea.vmem %s481_s6, 128  ;;  %p617_p3 = scmp.lt.s32.totalorder %s481_s6, %s481_s6 }
  0x2c   :  { %44 = vmax.xlane.f32.xlu0 %v43_v2  ;;  %p613_p2 = scmp.ne.s32.totalorder %s481_s6, %s612_s7  ;;  %p618_p4 = scmp.lt.s32.totalorder %s612_s7, %s612_s7 }
  0x2e   :  { %p619_p5 = por %p618_p4, %p617_p3 }
  0x30   :  { %p620_p6 = pnand %p619_p5, %p613_p2 }
  0xb5   :  { %v42_v5 = vpop.xlane.xlu0 %41 }
  0xb6   :  { %v48_v9 = vsub.f32 %v38_v0, %v42_v5 }
  0xb8   :  { %v49_v10 = vmul.f32 6.2831855, %v48_v9 }
  0xb9   :  { %v45_v6 = vpop.xlane.xlu0 %44 }
  0xba   :  { %v46_v7 = vsub.f32 %v45_v6, %v42_v5 }
  0xbc   :  { %v47_v8 = vmax.f32 %v46_v7, 1e-12 }
  0xbe   :  { %562 = vrcp.f32 %v47_v8 }
  0xc8   :  { %v563_v11 = vpop.eup %562 }
  0xc9   :  { %v51_v12 = vmul.f32 %v563_v11, %v49_v10 }
  0xcb   :  { %v706_v13 = vmul.f32 0.5, %v51_v12 }
  0xcd   :  { %v56_v14 = vand.u32 2139095040, %v706_v13  ;;  %v53_v15 = vand.u32 2147483647, %v706_v13  ;;  %vm55_vm8 = vcmp.lt.s32.totalorder %v706_v13, 0  ;;  %vm145_vm15 = vweird.f32 %v706_v13 }
  0xcf   :  { %v57_v16 = vshrl.u32 %v56_v14, 23  ;;  %v60_v18 = vand.u32 8388607, %v53_v15  ;;  %vm54_vm9 = vcmp.le.f32.partialorder %v53_v15, 0.7853982 }
  0xd1   :  { %v490_v17 = vadd.s32 4294967169, %v57_v16  ;;  %v61_v21 = vor.u32 8388608, %v60_v18 }
  0xd3   :  { %v63_v19 = vadd.s32 1, %v490_v17  ;;  %v101_v29 = vshll.u32 %v61_v21, 8 }
  0xd5   :  { %vm64_vm1 = vcmp.gt.s32.totalorder %v63_v19, 0 }
  0xd6   :  { %v65_v20 = vsel %vm64_vm1, %v63_v19, 0 }
  0xd7   :  { %v67_v22 = vand.u32 31, %v65_v20  ;;  %v66_v23 = vshrl.u32 %v65_v20, 5 }
  0xd9   :  { %v68_v24 = vsub.s32 32, %v67_v22  ;;  %v79_v26 = vshll.u32 %v646_v25, %v67_v22  ;;  %v82_v28 = vshll.u32 %v647_v27, %v67_v22  ;;  %v70_v34 = vshll.u32 %v649_v33, %v67_v22 }
  0xda   :  { %v73_v37 = vshll.u32 %v650_v35, %v67_v22  ;;  %v76_v40 = vshll.u32 %v651_v38, %v67_v22  ;;  %vm88_vm2 = vcmp.lt.s32.totalorder %v66_v23, 4  ;;  %vm85_vm3 = vcmp.lt.s32.totalorder %v66_v23, 1 }
  0xdb   :  { %v80_v30 = vshrl.u32 %v647_v27, %v68_v24  ;;  %v83_v32 = vshrl.u32 %v648_v31, %v68_v24  ;;  %v71_v36 = vshrl.u32 %v650_v35, %v68_v24  ;;  %v74_v39 = vshrl.u32 %v651_v38, %v68_v24 }
  0xdc   :  { %v77_v41 = vshrl.u32 %v646_v25, %v68_v24  ;;  %v69_v45 = vshrl.u32 %v649_v33, %v68_v24  ;;  %vm86_vm4 = vcmp.lt.s32.totalorder %v66_v23, 2  ;;  %vm87_vm5 = vcmp.lt.s32.totalorder %v66_v23, 3 }
  0xdd   :  { %v81_v42 = vor.u32 %v80_v30, %v79_v26  ;;  %v84_v43 = vor.u32 %v83_v32, %v82_v28  ;;  %v72_v44 = vor.u32 %v71_v36, %v70_v34  ;;  %v75_v46 = vor.u32 %v74_v39, %v73_v37 }
  0xde   :  { %v78_v47 = vor.u32 %v77_v41, %v76_v40 }
  0xdf   :  { %v94_v48 = vsel %vm88_vm2, %v81_v42, 920167782  ;;  %v98_v49 = vsel %vm88_vm2, %v84_v43, 1326507024  ;;  %v93_v51 = vsel %vm85_vm3, %v72_v44, %v75_v46  ;;  %v89_v54 = vsel %vm85_vm3, %v69_v45, %v72_v44 }
  0xe0   :  { %v90_v50 = vsel %vm88_vm2, %v78_v47, 2102212464  ;;  %v95_v52 = vsel %vm87_vm5, %v78_v47, %v94_v48  ;;  %v97_v53 = vsel %vm85_vm3, %v75_v46, %v78_v47  ;;  %v99_v57 = vsel %vm87_vm5, %v81_v42, %v98_v49 }
  0xe1   :  { %v91_v55 = vsel %vm87_vm5, %v75_v46, %v90_v50  ;;  %v96_v56 = vsel %vm86_vm4, %v93_v51, %v95_v52  ;;  %v100_v58 = vsel %vm86_vm4, %v97_v53, %v99_v57  ;;  %v652_v48 = vmov 6   ;;  %v368_v50 = vld [vmem:[#allocation5 + $0x8] sm:$0xff]  ;;  %v370_v51 = vld [vmem:[#allocation5 + $0x18] sm:$0xff]  ;;  %v367_v52 = vld [vmem:[#allocation5] sm:$0xff] }
  0xe2   :  { %v712_v59 = vmul.u32.u64.low %v101_v29, %v96_v56  ;;  %v713_v60 = vmul.u32.u64.high %v101_v29, %v96_v56, %v712_v59  ;;  %v715_v61 = vmul.u32.u64.low %v101_v29, %v100_v58  ;;  %v716_v62 = vmul.u32.u64.high %v101_v29, %v100_v58, %v715_v61  ;;  %v374_v56 = vld [vmem:[#allocation5 + $0x38] sm:$0xff]  ;;  %v371_v57 = vld [vmem:[#allocation5 + $0x20] sm:$0xff] }
  0xe3   :  { %v92_v63 = vsel %vm86_vm4, %v89_v54, %v91_v55  ;;  %v654_v49 = vmov 3   ;;  %v498_v53 = vpack.c.bf16 %v370_v51, %v368_v50  ;;  %v369_v54 = vld [vmem:[#allocation5 + $0x10] sm:$0xff]  ;;  %v655_v61 = vmov 4  }
  0xe4   :  { %v111_v0 = vadd.s32 1, %v713_v60  ;;  %v108_v1 = vmul.u32 %v101_v29, %v92_v63  ;;  %vm110_vm6 = vc.u32 %v716_v62, %v712_v59  ;;  %v109_v16 = vadd.s32 %v712_v59, %v716_v62  ;;  %v373_v59 = vld [vmem:[#allocation5 + $0x30] sm:$0xff]  ;;  %v376_v62 = vld [vmem:[#allocation5 + $0x48] sm:$0xff]  ;;  %v378_v63 = vld [vmem:[#allocation5 + $0x58] sm:$0xff] }
  0xe5   :  { %v500_v55 = vpack.c.bf16 %v369_v54, %v367_v52  ;;  %499 = vmatprep.subr.bf16.mxu0 %v498_v53 }
  0xe6   :  { %v112_v2 = vsel %vm110_vm6, %v111_v0, %v713_v60  ;;  %v504_v60 = vpack.c.bf16 %v373_v59, %v371_v57  ;;  %v375_v0 = vld [vmem:[#allocation5 + $0x40] sm:$0xff] }
  0xe7   :  { %v113_v4 = vadd.s32 %v112_v2, %v108_v1  ;;  %501 = vmatpush1.bf16.msra.mxu0 %v500_v55  ;;  %v506_v1 = vpack.c.bf16 %v378_v63, %v376_v62  ;;  %v377_v2 = vld [vmem:[#allocation5 + $0x50] sm:$0xff] }
  0xe9   :  { %v114_v5 = vadd.s32 536870912, %v113_v4 }
  0xeb   :  { %v115_v6 = vshrl.u32 %v114_v5, 30  ;;  %v380_v5 = vld [vmem:[#allocation5 + $0x68] sm:$0xff] }
  0xed   :  { %v116_v7 = vshll.u32 %v115_v6, 30  ;;  %v139_v28 = vsub.s32 4, %v115_v6 }
  0xef   :  { %v117_v8 = vsub.s32 %v113_v4, %v116_v7  ;;  %v140_v31 = vsel %vm55_vm8, %v139_v28, %v115_v6  ;;  %v508_v4 = vpack.c.bf16 %v377_v2, %v375_v0  ;;  %v382_v6 = vld [vmem:[#allocation5 + $0x78] sm:$0xff] }
  0xf0   :  { %v142_v33 = vsel %vm54_vm9, 0, %v140_v31  ;;  %v510_v7 = vpack.c.bf16 %v382_v6, %v380_v5  ;;  %v396_v31 = vld [vmem:[#allocation5 + $0xe8] sm:$0xff] }
  0xf1   :  { %v119_v9 = vsub.s32 0, %v117_v8  ;;  %v249_v34 = vadd.s32 3, %v142_v33  ;;  %v146_v36 = vand.u32 3, %v142_v33  ;;  %v398_v33 = vld [vmem:[#allocation5 + $0xf8] sm:$0xff] }
  0xf3   :  { %v491_v10 = vmin.u32 %v119_v9, %v117_v8  ;;  %v250_v35 = vand.u32 3, %v249_v34  ;;  %vm148_vm12 = vcmp.eq.s32.totalorder %v146_v36, 0  ;;  %vm151_vm13 = vcmp.eq.s32.totalorder %v146_v36, 2  ;;  %v381_v9 = vld [vmem:[#allocation5 + $0x70] sm:$0xff] }
  0xf4   :  { %vm147_vm0 = vcmp.lt.s32.totalorder %v146_v36, 2  ;;  %v526_v34 = vpack.c.bf16 %v398_v33, %v396_v31  ;;  %v397_v36 = vld [vmem:[#allocation5 + $0xf0] sm:$0xff] }
  0xf5   :  { %v121_v11 = vclz %v491_v10  ;;  %vm255_vm10 = vcmp.eq.s32.totalorder %v250_v35, 2  ;;  %vm252_vm11 = vcmp.eq.s32.totalorder %v250_v35, 0  ;;  %vm251_vm14 = vcmp.lt.s32.totalorder %v250_v35, 2  ;;  %v395_v35 = vld [vmem:[#allocation5 + $0xe0] sm:$0xff] }
  0xf7   :  { %v492_v12 = vadd.s32 4294967294, %v121_v11  ;;  %v656_v11 = vmov 5  }
  0xf9   :  { %vm493_vm7 = vcmp.lt.s32.totalorder %v492_v12, 0 }
  0xfa   :  { %v124_v14 = vsel %vm493_vm7, 0, %v492_v12  ;;  %v384_v12 = vld [vmem:[#allocation5 + $0x88] sm:$0xff] }
  0xfb   :  { %v125_v17 = vsub.s32 32, %v124_v14  ;;  %v129_v18 = vsub.s32 4294967266, %v124_v14  ;;  %v126_v19 = vshll.u32 %v117_v8, %v124_v14  ;;  %v379_v8 = vld [vmem:[#allocation5 + $0x60] sm:$0xff]  ;;  %v386_v14 = vld [vmem:[#allocation5 + $0x98] sm:$0xff] }
  0xfc   :  { %v512_v10 = vpack.c.bf16 %v381_v9, %v379_v8 }
  0xfd   :  { %v127_v20 = vshrl.u32 %v109_v16, %v125_v17  ;;  %v130_v21 = vadd.s32 127, %v129_v18  ;;  %v383_v16 = vld [vmem:[#allocation5 + $0x80] sm:$0xff]  ;;  %v514_v17 = vpack.c.bf16 %v386_v14, %v384_v12  ;;  %v385_v18 = vld [vmem:[#allocation5 + $0x90] sm:$0xff] }
  0xff   :  { %v128_v22 = vor.u32 %v127_v20, %v126_v19  ;;  %v131_v23 = vshll.u32 %v130_v21, 23  ;;  %v516_v19 = vpack.c.bf16 %v385_v18, %v383_v16  ;;  %v388_v20 = vld [vmem:[#allocation5 + $0xa8] sm:$0xff]  ;;  %v390_v21 = vld [vmem:[#allocation5 + $0xb8] sm:$0xff] }
 0x101   :  { %v132_v24 = vor.u32 4788187, %v131_v23  ;;  %v135_v26 = vcvt.s32.f32 %v128_v22  ;;  %v518_v22 = vpack.c.bf16 %v390_v21, %v388_v20  ;;  %v387_v23 = vld [vmem:[#allocation5 + $0xa0] sm:$0xff] }
 0x103   :  { %v133_v25 = vand.u32 2147483647, %v132_v24  ;;  %v389_v24 = vld [vmem:[#allocation5 + $0xb0] sm:$0xff] }
 0x105   :  { %v136_v27 = vmul.f32 %v135_v26, %v133_v25  ;;  %v520_v25 = vpack.c.bf16 %v389_v24, %v387_v23  ;;  %v392_v26 = vld [vmem:[#allocation5 + $0xc8] sm:$0xff] }
 0x107   :  { %v137_v29 = vxor.u32 2147483648, %v136_v27 }
 0x109   :  { %v138_v30 = vsel %vm55_vm8, %v137_v29, %v136_v27  ;;  %v394_v27 = vld [vmem:[#allocation5 + $0xd8] sm:$0xff]  ;;  %v391_v29 = vld [vmem:[#allocation5 + $0xc0] sm:$0xff] }
 0x10a   :  { %v141_v32 = vsel %vm54_vm9, %v706_v13, %v138_v30  ;;  %v653_v13 = vmov 2   ;;  %v522_v28 = vpack.c.bf16 %v394_v27, %v392_v26  ;;  %v393_v30 = vld [vmem:[#allocation5 + $0xd0] sm:$0xff] }
 0x10b   :  { %564 = vcosq.f32 %v141_v32 }
 0x10c   :  { %566 = vsinq.f32 %v141_v32  ;;  %v524_v32 = vpack.c.bf16 %v393_v30, %v391_v29 }
 0x115   :  { %v565_v37 = vpop.eup %564 }
 0x116   :  { %v567_v38 = vpop.eup %566  ;;  %v152_v39 = vxor.u32 2147483648, %v565_v37 }
 0x117   :  { %v149_v40 = vxor.u32 2147483648, %v567_v38 }
 0x118   :  { %v257_v41 = vsel %vm255_vm10, %v152_v39, %v567_v38  ;;  %v153_v43 = vsel %vm151_vm13, %v152_v39, %v567_v38  ;;  %v657_v38 = vmov 0.0  }
 0x119   :  { %v254_v15 = vsel %vm252_vm11, %v565_v37, %v149_v40  ;;  %v150_v42 = vsel %vm148_vm12, %v565_v37, %v149_v40  ;;  %v528_v37 = vpack.c.bf16 %v397_v36, %v395_v35  ;;  %463 = vmatprep.mubr.f32.mxu0 %v657_v38 }
 0x11a   :  { %v258_v44 = vsel %vm251_vm14, %v254_v15, %v257_v41  ;;  %v154_v46 = vsel %vm147_vm0, %v150_v42, %v153_v43 }
 0x11b   :  { %v727_v45 = vsel %vm145_vm15, nan, %v258_v44  ;;  %v731_v47 = vsel %vm145_vm15, nan, %v154_v46  ;;  %v260_v44 = vlaneseq }
 0x11c   :  { %283 = vperm.xlu0 %554, %v727_v45   ;;  %268 = vperm.xlu1 %553, %v727_v45  }
 0x11d   :  { %v261_v46 = vand.u32 127, %v260_v44 }
 0x11f   :  { %v307_v51 = vshra.s32 %v261_v46, 3  ;;  %v322_v54 = vshra.s32 %v261_v46, 4 }
 0x120   :  { %273 = vperm.xlu1 %553, %v731_v47   ;;  %561 = vset.pattern.permute.xlu0 %v652_v48 }
 0x121   :  { %v308_v55 = vand.u32 1, %v307_v51 }
 0x123   :  { %vm309_vm4 = vcmp.eq.s32.totalorder %v308_v55, 1 }
 0x124   :  { %555 = vset.pattern.permute.xlu1 %v644_v3  ;;  %v372_v3 = vld [vmem:[#allocation5 + $0x28] sm:$0xff] }
 0x125   :  { %287 = vperm.xlu1 %555, %v731_v47   ;;  %v502_v58 = vpack.c.bf16 %v374_v56, %v372_v3  ;;  %v337_v3 = vshra.s32 %v261_v46, 5 }
 0x127   :  { %503 = vmatprep.subr.bf16.mxu0 %v502_v58  ;;  %v323_v58 = vand.u32 1, %v322_v54 }
 0x128   :  { %505 = vmatpush1.bf16.msra.mxu0 %v504_v60  ;;  %v338_v60 = vand.u32 1, %v337_v3 }
 0x129   :  { %556 = vset.pattern.permute.xlu1 %v653_v13  ;;  %507 = vmatprep.subr.bf16.mxu0 %v506_v1  ;;  %vm324_vm5 = vcmp.eq.s32.totalorder %v323_v58, 1 }
 0x12a   :  { %298 = vperm.xlu1 %556, %v727_v45   ;;  %vm339_vm6 = vcmp.eq.s32.totalorder %v338_v60, 1 }
 0x12c   :  { %509 = vmatpush1.bf16.msra.mxu0 %v508_v4 }
 0x12d   :  { %511 = vmatprep.subr.bf16.mxu0 %v510_v7 }
 0x12e   :  { %302 = vperm.xlu1 %556, %v731_v47  }
 0x130   :  { %513 = vmatpush1.bf16.msra.mxu0 %v512_v10 }
 0x131   :  { %515 = vmatprep.subr.bf16.mxu0 %v514_v17 }
 0x132   :  { %557 = vset.pattern.permute.xlu1 %v654_v49  ;;  %v292_v49 = vshra.s32 %v261_v46, 2 }
 0x133   :  { %313 = vperm.xlu1 %557, %v727_v45  }
 0x134   :  { %517 = vmatpush1.bf16.msra.mxu0 %v516_v19  ;;  %v293_v53 = vand.u32 1, %v292_v49 }
 0x135   :  { %519 = vmatprep.subr.bf16.mxu0 %v518_v22 }
 0x136   :  { %vm294_vm3 = vcmp.eq.s32.totalorder %v293_v53, 1 }
 0x137   :  { %317 = vperm.xlu1 %557, %v731_v47  }
 0x138   :  { %521 = vmatpush1.bf16.msra.mxu0 %v520_v25 }
 0x139   :  { %523 = vmatprep.subr.bf16.mxu0 %v522_v28 }
 0x13b   :  { %558 = vset.pattern.permute.xlu1 %v655_v61  ;;  %v352_v61 = vshra.s32 %v261_v46, 6 }
 0x13c   :  { %328 = vperm.xlu1 %558, %v727_v45   ;;  %525 = vmatpush1.bf16.msra.mxu0 %v524_v32 }
 0x13d   :  { %527 = vmatprep.subr.bf16.mxu0 %v526_v34  ;;  %v353_v5 = vand.u32 1, %v352_v61 }
 0x13f   :  { %vm354_vm7 = vcmp.eq.s32.totalorder %v353_v5, 1 }
 0x140   :  { %332 = vperm.xlu1 %558, %v731_v47   ;;  %529 = vmatpush1.bf16.msra.mxu0 %v528_v37 }
 0x144   :  { %559 = vset.pattern.permute.xlu1 %v656_v11 }
 0x145   :  { %343 = vperm.xlu1 %559, %v727_v45  }
 0x149   :  { %347 = vperm.xlu1 %559, %v731_v47  }
 0x14d   :  { %560 = vset.pattern.permute.xlu1 %v652_v48  ;;  %v277_v48 = vshra.s32 %v261_v46, 1 }
 0x14e   :  { %358 = vperm.xlu1 %560, %v727_v45  }
 0x14f   :  { %v278_v50 = vand.u32 1, %v277_v48 }
 0x151   :  { %vm279_vm1 = vcmp.eq.s32.totalorder %v278_v50, 1 }
 0x152   :  { %362 = vperm.xlu1 %560, %v731_v47   ;;  %v262_v47 = vand.u32 1, %v261_v46 }
 0x154   :  { %vm263_vm2 = vcmp.eq.s32.totalorder %v262_v47, 1 }
 0x19b   :  { %v269_v39 = vpop.permute.xlu1 %268  ;;  %v284_v57 = vpop.permute.xlu0 %283 }
 0x19f   :  { %v274_v40 = vpop.permute.xlu1 %273 }
 0x1a0   :  { %v276_v62 = vsel %vm263_vm2, %v269_v39, %v274_v40 }
 0x1a4   :  { %v288_v41 = vpop.permute.xlu1 %287 }
 0x1a5   :  { %v290_v59 = vsel %vm279_vm1, %v284_v57, %v288_v41 }
 0x1a6   :  { %v291_v1 = vmul.f32 %v290_v59, %v276_v62 }
 0x1a9   :  { %v299_v15 = vpop.permute.xlu1 %298 }
 0x1ad   :  { %v303_v42 = vpop.permute.xlu1 %302 }
 0x1ae   :  { %v305_v63 = vsel %vm294_vm3, %v299_v15, %v303_v42 }
 0x1af   :  { %v306_v4 = vmul.f32 %v305_v63, %v291_v1 }
 0x1b2   :  { %v314_v43 = vpop.permute.xlu1 %313 }
 0x1b6   :  { %v318_v45 = vpop.permute.xlu1 %317 }
 0x1b7   :  { %v320_v2 = vsel %vm309_vm4, %v314_v43, %v318_v45 }
 0x1b8   :  { %v321_v7 = vmul.f32 %v320_v2, %v306_v4 }
 0x1bb   :  { %v329_v13 = vpop.permute.xlu1 %328 }
 0x1bf   :  { %v333_v52 = vpop.permute.xlu1 %332 }
 0x1c0   :  { %v335_v6 = vsel %vm324_vm5, %v329_v13, %v333_v52 }
 0x1c1   :  { %v336_v10 = vmul.f32 %v335_v6, %v321_v7 }
 0x1c4   :  { %v344_v56 = vpop.permute.xlu1 %343 }
 0x1c8   :  { %v348_v0 = vpop.permute.xlu1 %347 }
 0x1c9   :  { %v350_v9 = vsel %vm339_vm6, %v344_v56, %v348_v0 }
 0x1ca   :  { %v351_v11 = vmul.f32 %v350_v9, %v336_v10 }
 0x1cd   :  { %v359_v8 = vpop.permute.xlu1 %358 }
 0x1d1   :  { %v363_v12 = vpop.permute.xlu1 %362 }
 0x1d2   :  { %v365_v14 = vsel %vm354_vm7, %v359_v8, %v363_v12 }
 0x1d3   :  { %v366_v16 = vmul.f32 %v365_v14, %v351_v11 }
 0x1d5   :  { %464 = vmatmul.mubr.f32.vlgmr.msra.gmra.mrb[0].mxu0 %v366_v16 }
 0x2a8   :  { %v465_v17 = vpop.f32.mrb[0].mxu0 }
 0x2a9   :  { %v470_v18 = vmul.f32 %v465_v17, %v465_v17  ;;  %v467_v19 = vpop.f32.mrb[1].mxu0 }
 0x2aa   :  { %v471_v20 = vmul.f32 %v467_v19, %v467_v19 }
 0x2ac   :  { %v472_v21 = vadd.f32 %v471_v20, %v470_v18 }
 0x2ae   :  { %473 = vst [vmem:[#allocation7] sm:$0xff] %v472_v21 }
 0x2af   :  { %623 = shalt.err (!%p620_p6)
}
 0x2b0   :  { %s624_s10 = scalar_lea.hbm %s762_s2, 128 }
 0x2b1   :  { %p625_p7 = scmp.ne.s32.totalorder %s762_s2, %s624_s10  ;;  %p628_p8 = scmp.lt.u32.totalorder %s624_s10, %s762_s2 }
 0x2b3   :  { %p630_p9 = pnand %p628_p8, %p625_p7 }
 0x2b5   :  { %633 = shalt.err (!%p630_p9)
}
 0x2b6   :  { %483 = dma.vmem_to_hbm [thread:$0]  %s481_s6, 128, %s762_s2, [#allocation4]  }
 0x2b7   :  { %638 = dma.done.wait [#allocation4], 128  }
 0x2b8   :  { %639 = vsyncadd [#allocation4], 4294967168 }
 0x2b9   :  { %487 = vsyncpa [#allocation3], 1 }
 0x2ba   :  { %488 = vsyncpa [#allocation6], 1 }
 0x2bb   :  { %489 = vsyncpa [#allocation4], 1 }

</bundles_post_ra>
